<compile_context>
chip_gen: v7x
topology: tpu7x:2x2x1
jax: 0.10.0
libtpu: 0.0.40
codegen_flags: <defaults>
</compile_context>

<pallas_src>
import functools

import jax
import jax.numpy as jnp
from jax.experimental import pallas as pl
from jax.experimental import pallas as _pl_unused  # keep namespace explicit
from jax.experimental.pallas import tpu as pltpu


LANE = 128            # TPU lane width; final output padded to a multiple of this.
DEFAULT_TILE_B = 256  # batch tile cap (f32 activations) — per perf review.


def _round_up(n, m):
    return ((n + m - 1) // m) * m


# ----------------------------------------------------------------------------
# Fused Pallas kernel: entire Generator forward for one batch tile
# ----------------------------------------------------------------------------
def _fused_generator_kernel(layout, x_ref, *refs):
    """refs = (w0, w1, ..., w_final, packed_biases, o_ref).

    Weights are bf16 (VMEM-resident across all grid steps); biases are packed
    into a single f32 (n_layers, N_max) array and indexed with static rows.
    `layout` is a static Python structure; the layer sequence is Python-
    unrolled into straight-line code.
    """
    o_ref = refs[-1]
    bias_ref = refs[-2]
    w_refs = refs[:-2]

    widx = 0
    brow = 0

    def next_w():
        nonlocal widx
        r = w_refs[widx]
        widx += 1
        return r

    def next_b(width):
        nonlocal brow
        b = bias_ref[brow:brow + 1, :width]   # static slice, (1, width) f32
        brow += 1
        return b

    h = x_ref[...].astype(jnp.float32)

    for blk in layout["blocks"]:
        block_in = h
        # Hidden layers: relu(x @ W + b) — bf16 matmul operands, f32 epilogue.
        for _ in range(blk["n_hidden"]):
            w = next_w()[...]
            b = next_b(w.shape[1])
            acc = jnp.dot(h.astype(w.dtype), w,
                          preferred_element_type=jnp.float32) + b
            h = jnp.maximum(acc, 0.0)
        # Block-out linear, fused with the skip path in one f32 accumulator.
        w = next_w()[...]
        b = next_b(w.shape[1])
        acc = jnp.dot(h.astype(w.dtype), w,
                      preferred_element_type=jnp.float32) + b
        if blk["has_skip"]:
            ws = next_w()[...]  # bias-free projection
            acc = acc + jnp.dot(block_in.astype(ws.dtype), ws,
                                preferred_element_type=jnp.float32)
        else:
            acc = acc + block_in
        h = acc

    # Final nn.Linear (weights pre-padded to a lane-dense width).
    wf = next_w()[...]
    bf = next_b(wf.shape[1])
    y = jnp.dot(h.astype(wf.dtype), wf, preferred_element_type=jnp.float32) + bf
    o_ref[...] = y.astype(o_ref.dtype)


def _flatten_params(params, out_pad, weight_dtype=jnp.bfloat16):
    """Flatten params into kernel positional order.

    Returns (weights, packed_biases, layout, true_out_dim).  Weights are cast
    to `weight_dtype`; all biases are packed into one (n_layers, N_max) f32
    array; the final layer is zero-padded to `out_pad` lanes for a lane-dense
    output store.
    """
    weights = []
    biases = []
    layout = {"blocks": []}
    for block in params["residuals"]:
        layout["blocks"].append({
            "n_hidden": len(block["hidden"]),
            "has_skip": block["skip"] is not None,
        })
        for layer in block["hidden"]:
            weights.append(layer["w"].astype(weight_dtype))
            biases.append(layer["b"].astype(jnp.float32))
        weights.append(block["out"]["w"].astype(weight_dtype))
        biases.append(block["out"]["b"].astype(jnp.float32))
        if block["skip"] is not None:
            weights.append(block["skip"]["w"].astype(weight_dtype))

    wf = params["final"]["w"]
    bfin = params["final"]["b"]
    n = wf.shape[1]
    pad = out_pad - n
    weights.append(jnp.pad(wf, ((0, 0), (0, pad))).astype(weight_dtype))
    biases.append(jnp.pad(bfin, (0, pad)).astype(jnp.float32))

    n_max = max(b.shape[0] for b in biases)
    packed = jnp.stack([jnp.pad(b, (0, n_max - b.shape[0])) for b in biases])
    return weights, packed, layout, n


def generator_forward(params, x, *, tile_b=DEFAULT_TILE_B, unpad_output=True):
    """Fused Generator forward: one pallas_call, batch-gridded."""
    B, emb_dim = x.shape
    out_dim = params["final"]["w"].shape[1]
    out_pad = max(LANE, _round_up(out_dim, LANE))

    weights, biases, layout, true_n = _flatten_params(params, out_pad)

    # Batch tile: multiple of 8 (sublane), capped to keep live activations in
    # vregs; pad the batch so the grid divides evenly.
    tile_b = min(tile_b, _round_up(B, 8))
    b_pad = _round_up(B, tile_b)
    if b_pad != B:
        x = jnp.pad(x, ((0, b_pad - B), (0, 0)))
    grid = (b_pad // tile_b,)

    def resident(shape):
        # Weight/bias blocks: full array, same block on every grid step →
        # stays VMEM-resident across the whole grid.
        return pl.BlockSpec(shape, lambda i: tuple(0 for _ in shape))

    in_specs = (
        [pl.BlockSpec((tile_b, emb_dim), lambda i: (i, 0))]
        + [resident(w.shape) for w in weights]
        + [resident(biases.shape)]
    )
    out_specs = pl.BlockSpec((tile_b, out_pad), lambda i: (i, 0))

    kernel = functools.partial(_fused_generator_kernel, layout)
    y = pl.pallas_call(
        kernel,
        out_shape=jax.ShapeDtypeStruct((b_pad, out_pad), x.dtype),
        grid=grid,
        in_specs=in_specs,
        out_specs=out_specs,
        compiler_params=pltpu.CompilerParams(
            dimension_semantics=("parallel",)),
    )(x, *weights, biases)

    if unpad_output:
        # Callers that can consume the lane/batch-padded slab should pass
        # unpad_output=False and slice at the point of use instead.
        y = y[:B, :true_n]
    return y


# ----------------------------------------------------------------------------
# Parameter construction (deterministic, PyTorch nn.Linear default init)
# ----------------------------------------------------------------------------
def _init_linear(key, in_dim, out_dim, dtype=jnp.float32):
    kw, kb = jax.random.split(key)
    bound = 1.0 / (in_dim ** 0.5)
    # Stored as (in, out) so forward is x @ W + b.
    w = jax.random.uniform(kw, (in_dim, out_dim), dtype, -bound, bound)
    b = jax.random.uniform(kb, (out_dim,), dtype, -bound, bound)
    return {"w": w, "b": b}


def init_generator_params(key, emb_dim, out_dim,
                          layer_dims=(128,), residual_layer_dims=((128,),)):
    layer_dims = list(layer_dims)
    residual_layer_dims = [list(r) for r in residual_layer_dims]
    if residual_layer_dims and len(layer_dims) != len(residual_layer_dims):
        raise ValueError(
            "Number of layer dims must match the number of residual layers.")

    dims = [emb_dim] + layer_dims
    params = {"residuals": [], "final": None}

    for i, (in_, out) in enumerate(zip(dims[:-1], dims[1:])):
        rdims = residual_layer_dims[i]
        block = {"hidden": [], "out": None, "skip": None}
        d_prev = in_
        for d in rdims:
            key, sub = jax.random.split(key)
            block["hidden"].append(_init_linear(sub, d_prev, d))
            d_prev = d
        key, sub = jax.random.split(key)
        block["out"] = _init_linear(sub, d_prev, out)
        if in_ != out:
            key, sub = jax.random.split(key)
            skip = _init_linear(sub, in_, out)
            skip["b"] = jnp.zeros_like(skip["b"])  # bias-free projection
            block["skip"] = skip
        params["residuals"].append(block)

    key, sub = jax.random.split(key)
    params["final"] = _init_linear(sub, dims[-1], out_dim)
    return params


# ----------------------------------------------------------------------------
# Pure-JAX reference (same bf16 matmul operands / f32 epilogue as the kernel)
# ----------------------------------------------------------------------------
def _ref_forward(params, x):
    def d(a, w):
        return jnp.dot(a.astype(jnp.bfloat16), w.astype(jnp.bfloat16),
                       preferred_element_type=jnp.float32)

    h = x.astype(jnp.float32)
    for block in params["residuals"]:
        block_in = h
        for layer in block["hidden"]:
            h = jnp.maximum(d(h, layer["w"]) + layer["b"], 0.0)
        h = d(h, block["out"]["w"]) + block["out"]["b"]
        if block["skip"] is None:
            h = h + block_in
        else:
            h = h + d(block_in, block["skip"]["w"])
    fin = params["final"]
    return d(h, fin["w"]) + fin["b"]


if __name__ == "__main__":
    EMB_DIM = 32
    OUT_DIM = 16
    LAYER_DIMS = (128,)
    RESIDUAL_LAYER_DIMS = ((128,),)

    root = jax.random.PRNGKey(0)
    k_param, k_x1, k_x2 = jax.random.split(root, 3)

    params = init_generator_params(
        k_param, EMB_DIM, OUT_DIM,
        layer_dims=LAYER_DIMS, residual_layer_dims=RESIDUAL_LAYER_DIMS)

    fwd = jax.jit(generator_forward, static_argnames=("tile_b", "unpad_output"))
    ref_fn = jax.jit(_ref_forward)

    # Case 1: batch divides the tile → multi-step grid (64 rows, tile 32).
    x1 = jax.random.normal(k_x1, (64, EMB_DIM), dtype=jnp.float32)
    out1 = jax.block_until_ready(fwd(params, x1, tile_b=32))
    ref1 = ref_fn(params, x1)
    assert out1.shape == (64, OUT_DIM), out1.shape
    assert jnp.allclose(out1, ref1, atol=1e-2, rtol=1e-2), "mismatch (case 1)"

    # Case 2: odd batch exercises the batch-padding path (default tile cap).
    x2 = jax.random.normal(k_x2, (50, EMB_DIM), dtype=jnp.float32)
    out2 = jax.block_until_ready(fwd(params, x2))
    ref2 = ref_fn(params, x2)
    assert out2.shape == (50, OUT_DIM), out2.shape
    assert jnp.allclose(out2, ref2, atol=1e-2, rtol=1e-2), "mismatch (case 2)"

    print("KERNEL_OK")
</pallas_src>

<mosaic_0001>
module attributes {stable_mosaic.version = 11 : i64} {
  func.func @_fused_generator_kernel(%arg0: i32, %arg1: memref<32x32xf32, #tpu.memory_space<vmem>>, %arg2: memref<32x128xbf16, #tpu.memory_space<vmem>>, %arg3: memref<128x128xbf16, #tpu.memory_space<vmem>>, %arg4: memref<32x128xbf16, #tpu.memory_space<vmem>>, %arg5: memref<128x128xbf16, #tpu.memory_space<vmem>>, %arg6: memref<3x128xf32, #tpu.memory_space<vmem>>, %arg7: memref<32x128xf32, #tpu.memory_space<vmem>>) attributes {dimension_semantics = [#tpu.dimension_semantics<parallel>], iteration_bounds = array<i64: 2>, scalar_prefetch = 0 : i64, scratch_operands = 0 : i64, tpu.core_type = #tpu.core_type<tc>, window_params = [{transform_indices = @transform_0, window_bounds = array<i64: 32, 32>}, {pipeline_mode = #tpu.pipeline_mode<synchronous>, transform_indices = @transform_1, window_bounds = array<i64: 32, 128>}, {pipeline_mode = #tpu.pipeline_mode<synchronous>, transform_indices = @transform_2, window_bounds = array<i64: 128, 128>}, {pipeline_mode = #tpu.pipeline_mode<synchronous>, transform_indices = @transform_3, window_bounds = array<i64: 32, 128>}, {pipeline_mode = #tpu.pipeline_mode<synchronous>, transform_indices = @transform_4, window_bounds = array<i64: 128, 128>}, {pipeline_mode = #tpu.pipeline_mode<synchronous>, transform_indices = @transform_5, window_bounds = array<i64: 3, 128>}, {transform_indices = @transform_6, window_bounds = array<i64: 32, 128>}]} {
    %c0 = arith.constant 0 : index
    %c0_0 = arith.constant 0 : index
    %0 = vector.load %arg1[%c0, %c0_0] : memref<32x32xf32, #tpu.memory_space<vmem>>, vector<32x32xf32>
    %c0_1 = arith.constant 0 : index
    %c0_2 = arith.constant 0 : index
    %1 = vector.load %arg2[%c0_1, %c0_2] : memref<32x128xbf16, #tpu.memory_space<vmem>>, vector<32x128xbf16>
    %c0_3 = arith.constant 0 : index
    %c0_4 = arith.constant 0 : index
    %2 = vector.load %arg6[%c0_3, %c0_4] : memref<3x128xf32, #tpu.memory_space<vmem>>, vector<1x128xf32>
    %3 = arith.truncf %0 : vector<32x32xf32> to vector<32x32xbf16>
    %cst = arith.constant dense<0.000000e+00> : vector<32x128xf32>
    %4 = tpu.matmul %3, %1, %cst {dimension_numbers = #tpu.dot_dimension_numbers<[1], [0], [0], [1], [0, 0, 1, 1], [], []>} : vector<32x32xbf16>, vector<32x128xbf16>, vector<32x128xf32> -> vector<32x128xf32>
    %5 = vector.broadcast %2 : vector<1x128xf32> to vector<32x128xf32>
    %6 = arith.addf %4, %5 : vector<32x128xf32>
    %cst_5 = arith.constant 0.000000e+00 : f32
    %7 = vector.broadcast %cst_5 : f32 to vector<32x128xf32>
    %8 = arith.maximumf %6, %7 : vector<32x128xf32>
    %c0_6 = arith.constant 0 : index
    %c0_7 = arith.constant 0 : index
    %9 = vector.load %arg3[%c0_6, %c0_7] : memref<128x128xbf16, #tpu.memory_space<vmem>>, vector<128x128xbf16>
    %c1 = arith.constant 1 : index
    %c0_8 = arith.constant 0 : index
    %10 = vector.load %arg6[%c1, %c0_8] : memref<3x128xf32, #tpu.memory_space<vmem>>, vector<1x128xf32>
    %11 = arith.truncf %8 : vector<32x128xf32> to vector<32x128xbf16>
    %cst_9 = arith.constant dense<0.000000e+00> : vector<32x128xf32>
    %12 = tpu.matmul %11, %9, %cst_9 {dimension_numbers = #tpu.dot_dimension_numbers<[1], [0], [0], [1], [0, 0, 1, 1], [], []>} : vector<32x128xbf16>, vector<128x128xbf16>, vector<32x128xf32> -> vector<32x128xf32>
    %13 = vector.broadcast %10 : vector<1x128xf32> to vector<32x128xf32>
    %14 = arith.addf %12, %13 : vector<32x128xf32>
    %c0_10 = arith.constant 0 : index
    %c0_11 = arith.constant 0 : index
    %15 = vector.load %arg4[%c0_10, %c0_11] : memref<32x128xbf16, #tpu.memory_space<vmem>>, vector<32x128xbf16>
    %16 = arith.truncf %0 : vector<32x32xf32> to vector<32x32xbf16>
    %cst_12 = arith.constant dense<0.000000e+00> : vector<32x128xf32>
    %17 = tpu.matmul %16, %15, %cst_12 {dimension_numbers = #tpu.dot_dimension_numbers<[1], [0], [0], [1], [0, 0, 1, 1], [], []>} : vector<32x32xbf16>, vector<32x128xbf16>, vector<32x128xf32> -> vector<32x128xf32>
    %18 = arith.addf %14, %17 : vector<32x128xf32>
    %c0_13 = arith.constant 0 : index
    %c0_14 = arith.constant 0 : index
    %19 = vector.load %arg5[%c0_13, %c0_14] : memref<128x128xbf16, #tpu.memory_space<vmem>>, vector<128x128xbf16>
    %c2 = arith.constant 2 : index
    %c0_15 = arith.constant 0 : index
    %20 = vector.load %arg6[%c2, %c0_15] : memref<3x128xf32, #tpu.memory_space<vmem>>, vector<1x128xf32>
    %21 = arith.truncf %18 : vector<32x128xf32> to vector<32x128xbf16>
    %cst_16 = arith.constant dense<0.000000e+00> : vector<32x128xf32>
    %22 = tpu.matmul %21, %19, %cst_16 {dimension_numbers = #tpu.dot_dimension_numbers<[1], [0], [0], [1], [0, 0, 1, 1], [], []>} : vector<32x128xbf16>, vector<128x128xbf16>, vector<32x128xf32> -> vector<32x128xf32>
    %23 = vector.broadcast %20 : vector<1x128xf32> to vector<32x128xf32>
    %24 = arith.addf %22, %23 : vector<32x128xf32>
    %c0_17 = arith.constant 0 : index
    %c0_18 = arith.constant 0 : index
    %25 = vector.load %arg7[%c0_17, %c0_18] : memref<32x128xf32, #tpu.memory_space<vmem>>, vector<32x128xf32>
    tpu.vector_store %arg7[%c0_17, %c0_18], %24 {strides = array<i32>} : memref<32x128xf32, #tpu.memory_space<vmem>>, vector<32x128xf32>,
    return
  }
  func.func @transform_0(%arg0: i32) -> (i32, i32) {
    %c0_i32 = arith.constant 0 : i32
    %c0_i32_0 = arith.constant 0 : i32
    return %arg0, %c0_i32 : i32, i32
  }
  func.func @transform_1(%arg0: i32) -> (i32, i32) {
    %c0_i32 = arith.constant 0 : i32
    %c0_i32_0 = arith.constant 0 : i32
    %c0_i32_1 = arith.constant 0 : i32
    return %c0_i32, %c0_i32_0 : i32, i32
  }
  func.func @transform_2(%arg0: i32) -> (i32, i32) {
    %c0_i32 = arith.constant 0 : i32
    %c0_i32_0 = arith.constant 0 : i32
    %c0_i32_1 = arith.constant 0 : i32
    return %c0_i32, %c0_i32_0 : i32, i32
  }
  func.func @transform_3(%arg0: i32) -> (i32, i32) {
    %c0_i32 = arith.constant 0 : i32
    %c0_i32_0 = arith.constant 0 : i32
    %c0_i32_1 = arith.constant 0 : i32
    return %c0_i32, %c0_i32_0 : i32, i32
  }
  func.func @transform_4(%arg0: i32) -> (i32, i32) {
    %c0_i32 = arith.constant 0 : i32
    %c0_i32_0 = arith.constant 0 : i32
    %c0_i32_1 = arith.constant 0 : i32
    return %c0_i32, %c0_i32_0 : i32, i32
  }
  func.func @transform_5(%arg0: i32) -> (i32, i32) {
    %c0_i32 = arith.constant 0 : i32
    %c0_i32_0 = arith.constant 0 : i32
    %c0_i32_1 = arith.constant 0 : i32
    return %c0_i32, %c0_i32_0 : i32, i32
  }
  func.func @transform_6(%arg0: i32) -> (i32, i32) {
    %c0_i32 = arith.constant 0 : i32
    %c0_i32_0 = arith.constant 0 : i32
    return %arg0, %c0_i32 : i32, i32
  }
}

</mosaic_0001>

<bundles_post_ra>
// kernel: generator_forward.1
= control target key start
LH: loop header
LB: loop body
LE: loop exit
PB: predicated region body
PF: predicated region fallthrough
CT: control target
= control target key end

     0   :  { %s913_s21 = smov 0   ;;  %s1014_s0 = inlined_call_operand.vmem [shape: f32[64,32], index: 0, kind: input, shape index: {}]   ;;  %s1015_s1 = inlined_call_operand.vmem [shape: bf16[32,128], index: 1, kind: input, shape index: {}]   ;;  %s1016_s2 = inlined_call_operand.vmem [shape: bf16[128,128], index: 2, kind: input, shape index: {}]   ;;  %s1017_s3 = inlined_call_operand.vmem [shape: bf16[32,128], index: 3, kind: input, shape index: {}]   ;;  %s1018_s4 = inlined_call_operand.vmem [shape: bf16[128,128], index: 4, kind: input, shape index: {}]   ;;  %s1019_s5 = inlined_call_operand.vmem [shape: f32[3,128], index: 5, kind: input, shape index: {}]   ;;  %s1020_s6 = inlined_call_operand.vmem [shape: f32[64,128], index: 6, kind: output, shape index: {}]  }
   0x1 LB: > { %s712_s22 = sadd.s32 4294967295, %s876_s21   ;;  %p716_p0 = scmp.ge.s32.totalorder %s876_s21, 1  ;;  %s876_s21 = sphi %s913_s21, %s16_s21  }
   0x2   : > { %p213_p1 = scmp.lt.s32.totalorder %s876_s21, 3 }
   0x4   : > { %p214_p2 = pnand %p716_p0, %p213_p1 }
   0x5   : > { %v850_v0 = vld [vmem:[%s1015_s1] sm:$0xff] (!%p214_p2)   ;;  %s717_s25 = sshll.u32 (!%p214_p2), %s712_s22, 2  ;;  %v851_v1 = vld [vmem:[%s1015_s1 + $0x8] sm:$0xff] (!%p214_p2)   ;;  %v854_v4 = vld [vmem:[%s1016_s2 + $0x10] sm:$0xff] (!%p214_p2)   ;;  %vm283_vm0 = vcmask (!%p214_p2), 261120  }
   0x6   : > { %217 = sbr.rel (%p214_p2) target bundleno = 692 (0x2b4), region = 44  ;;  %p244_p3 = scmp.lt.s32.totalorder (!%p214_p2), %s717_s25, 7  ;;  %778 = vmatprep.subr.bf16.mxu0 (!%p214_p2), %v850_v0  ;;  %v852_v2 = vld [vmem:[%s1016_s2] sm:$0xff] (!%p214_p2)   ;;  %v853_v3 = vld [vmem:[%s1016_s2 + $0x8] sm:$0xff] (!%p214_p2)   ;;  %v855_v11 = vld [vmem:[%s1016_s2 + $0x18] sm:$0xff] (!%p214_p2)  }
   0x7   : > { %779 = vmatpush3.bf16.msra.mxu0 (!%p214_p2), %v850_v0  ;;  %786 = vmatprep.subr.bf16.mxu1 (!%p214_p2), %v852_v2  ;;  %v856_v12 = vld [vmem:[%s1016_s2 + $0x20] sm:$0xff] (!%p214_p2)   ;;  %v857_v13 = vld [vmem:[%s1016_s2 + $0x28] sm:$0xff] (!%p214_p2)   ;;  %v858_v14 = vld [vmem:[%s1016_s2 + $0x30] sm:$0xff] (!%p214_p2)  }
   0x8   : > { %780 = vmatprep.subr.bf16.mxu0 (!%p214_p2), %v851_v1  ;;  %787 = vmatpush3.bf16.msra.mxu1 (!%p214_p2), %v852_v2  ;;  %v859_v15 = vld [vmem:[%s1016_s2 + $0x38] sm:$0xff] (!%p214_p2)   ;;  %v860_v16 = vld [vmem:[%s1017_s3] sm:$0xff] (!%p214_p2)   ;;  %v863_v18 = vld [vmem:[%s1018_s4 + $0x8] sm:$0xff] (!%p214_p2)  }
   0x9   : > { %788 = vmatprep.subr.bf16.mxu1 (!%p214_p2), %v853_v3  ;;  %v862_v17 = vld [vmem:[%s1018_s4] sm:$0xff] (!%p214_p2)   ;;  %v864_v19 = vld [vmem:[%s1018_s4 + $0x10] sm:$0xff] (!%p214_p2)   ;;  %v865_v20 = vld [vmem:[%s1018_s4 + $0x18] sm:$0xff] (!%p214_p2)  }
   0xa   : > { %v866_v21 = vld [vmem:[%s1018_s4 + $0x20] sm:$0xff] (!%p214_p2)   ;;  %v867_v22 = vld [vmem:[%s1018_s4 + $0x28] sm:$0xff] (!%p214_p2)   ;;  %v868_v39 = vld [vmem:[%s1018_s4 + $0x30] sm:$0xff] (!%p214_p2)  }
   0xb   : > { %781 = vmatpush3.bf16.msra.mxu0 (!%p214_p2), %v851_v1  ;;  %v721_v23 = vld [vmem:[%s1019_s5] ss:$0 sm:$0xff] (!%p214_p2)  ;;  %v861_v38 = vld [vmem:[%s1017_s3 + $0x8] sm:$0xff] (!%p214_p2)   ;;  %v869_v40 = vld [vmem:[%s1018_s4 + $0x38] sm:$0xff] (!%p214_p2)  }
   0xc   : > { %789 = vmatpush3.bf16.msra.mxu1 (!%p214_p2), %v853_v3  ;;  %814 = vmatprep.subr.bf16.mxu0 (!%p214_p2), %v862_v17  ;;  %v726_v41 = vld [vmem:[%s1019_s5 + $0x1] ss:$0 sm:$0xff] (!%p214_p2)  ;;  %v739_v52 = vld [vmem:[%s1019_s5 + $0x2] ss:$0 sm:$0xff] (!%p214_p2) }
   0xd   : > { %s1022_s25 = smov (!%p244_p3, %s717_s25), 7  ;;  %790 = vmatprep.subr.bf16.mxu1 %v854_v4 }
   0xe   : > { %s718_s8 = sshll.u32 %s1022_s25, 3 }
   0xf   : > { %s247_s11 = scalar_lea.vmem %s1014_s0, %s718_s8  ;;  %s253_s10 = scalar_lea.vmem %s1020_s6, %s718_s8 }
  0x10   : > { %v256_v5 = vld [vmem:[%s247_s11] sm:$0xff]  ;;  %v257_v6 = vld [vmem:[%s247_s11 + $0x8] sm:$0xff]  ;;  %v258_v7 = vld [vmem:[%s247_s11 + $0x10] sm:$0xff]  ;;  %791 = vmatpush3.bf16.msra.mxu1 %v854_v4 }
  0x11   : > { %v265_v8 = vpack.c.bf16 %v257_v6, %v256_v5  ;;  %v259_v9 = vld [vmem:[%s247_s11 + $0x18] sm:$0xff]  ;;  %792 = vmatprep.subr.bf16.mxu1 %v855_v11 }
  0x12   : > { %v944_v10 = vpack.c.bf16 %v259_v9, %v258_v7 }
  0x13   : > { %782 = vmatprep.mubr.msk.bf16.mxu0 %vm283_vm0, %v265_v8 }
  0x14   : > { %783 = vmatmul.mubr.msk.bf16.vlgmr.msra.gmra.mrb[0].mxu0 %vm283_vm0, %v944_v10  ;;  %793 = vmatpush3.bf16.msra.mxu1 %v855_v11 }
  0x15   : > { %794 = vmatprep.subr.bf16.mxu1 %v856_v12  ;;  %815 = vmatpush3.bf16.msra.mxu0 %v862_v17 }
  0x16   : > { %816 = vmatprep.subr.bf16.mxu0 %v863_v18 }
  0x18   : > { %795 = vmatpush3.bf16.msra.mxu1 %v856_v12 }
  0x19   : > { %796 = vmatprep.subr.bf16.mxu1 %v857_v13  ;;  %817 = vmatpush3.bf16.msra.mxu0 %v863_v18 }
  0x1a   : > { %818 = vmatprep.subr.bf16.mxu0 %v864_v19 }
  0x1c   : > { %797 = vmatpush3.bf16.msra.mxu1 %v857_v13 }
  0x1d   : > { %798 = vmatprep.subr.bf16.mxu1 %v858_v14  ;;  %819 = vmatpush3.bf16.msra.mxu0 %v864_v19 }
  0x1e   : > { %820 = vmatprep.subr.bf16.mxu0 %v865_v20 }
  0x20   : > { %799 = vmatpush3.bf16.msra.mxu1 %v858_v14 }
  0x21   : > { %800 = vmatprep.subr.bf16.mxu1 %v859_v15  ;;  %821 = vmatpush3.bf16.msra.mxu0 %v865_v20 }
  0x22   : > { %822 = vmatprep.subr.bf16.mxu0 %v866_v21 }
  0x24   : > { %801 = vmatpush3.bf16.msra.mxu1 %v859_v15 }
  0x25   : > { %806 = vmatprep.subr.bf16.mxu1 %v860_v16  ;;  %823 = vmatpush3.bf16.msra.mxu0 %v866_v21 }
  0x26   : > { %824 = vmatprep.subr.bf16.mxu0 %v867_v22 }
  0x29   : > { %825 = vmatpush3.bf16.msra.mxu0 %v867_v22 }
  0x2a   : > { %826 = vmatprep.subr.bf16.mxu0 %v868_v39 }
  0x2d   : > { %827 = vmatpush3.bf16.msra.mxu0 %v868_v39 }
  0x2e   : > { %828 = vmatprep.subr.bf16.mxu0 %v869_v40 }
  0x31   : > { %829 = vmatpush3.bf16.msra.mxu0 %v869_v40 }
  0xe7   : > { %v784_v24 = vpop.f32.mrb[0].mxu0 }
  0xe8   : > { %v333_v25 = vadd.f32 %v784_v24, %v721_v23  ;;  %v324_v26 = vpop.f32.mrb[1].mxu0 }
  0xe9   : > { %v325_v27 = vadd.f32 %v721_v23, %v324_v26  ;;  %v785_v28 = vpop.f32.mrb[2].mxu0 }
  0xea   : > { %v336_v29 = vadd.f32 %v785_v28, %v721_v23  ;;  %v327_v30 = vpop.f32.mrb[3].mxu0  ;;  %v341_v32 = vmax.f32 %v333_v25, 0.0 }
  0xeb   : > { %v328_v31 = vadd.f32 %v721_v23, %v327_v30  ;;  %v339_v34 = vmax.f32 %v325_v27, 0.0 }
  0xec   : > { %v342_v33 = vmax.f32 %v336_v29, 0.0 }
  0xed   : > { %v340_v35 = vmax.f32 %v328_v31, 0.0 }
  0xee   : > { %v361_v36 = vpack.c.bf16 %v342_v33, %v341_v32 }
  0xef   : > { %v360_v37 = vpack.c.bf16 %v340_v35, %v339_v34 }
  0xf1   : > { %802 = vmatprep.mubr.bf16.mxu1 %v360_v37 }
  0xf2   : > { %803 = vmatmul.mubr.bf16.vlgmr.msra.gmra.mrb[0].mxu1 %v361_v36 }
  0xf3   : > { %807 = vmatpush3.bf16.msra.mxu1 %v860_v16  ;;  %810 = vmatprep.mubr.msk.bf16.mxu1 %vm283_vm0, %v265_v8 }
  0xf4   : > { %808 = vmatprep.subr.bf16.mxu1 %v861_v38 }
  0xf7   : > { %809 = vmatpush3.bf16.msra.mxu1 %v861_v38 }
  0xfe   : > { %811 = vmatmul.mubr.msk.bf16.vlgmr.msra.gmra.mrb[0].mxu1 %vm283_vm0, %v944_v10 }
 0x1d1   : > { %v812_v42 = vpop.f32.mrb[0].mxu1 }
 0x1d2   : > { %v513_v43 = vpop.f32.mrb[1].mxu1  ;;  %v834_v45 = vadd.f32 %v812_v42, %v726_v41 }
 0x1d3   : > { %v813_v44 = vpop.f32.mrb[2].mxu1  ;;  %v835_v48 = vadd.f32 %v726_v41, %v513_v43 }
 0x1d4   : > { %v836_v46 = vadd.f32 %v813_v44, %v726_v41  ;;  %v516_v47 = vpop.f32.mrb[3].mxu1 }
 0x1d5   : > { %v837_v49 = vadd.f32 %v726_v41, %v516_v47 }
 0x1d6   : > { %v550_v50 = vpack.c.bf16 %v836_v46, %v834_v45 }
 0x1d7   : > { %v549_v51 = vpack.c.bf16 %v837_v49, %v835_v48 }
 0x1d9   : > { %830 = vmatprep.mubr.bf16.mxu0 %v549_v51 }
 0x1da   : > { %831 = vmatmul.mubr.bf16.vlgmr.msra.gmra.mrb[4].mxu0 %v550_v50 }
 0x2ad   : > { %v832_v53 = vpop.f32.mrb[4].mxu0 }
 0x2ae   : > { %v637_v54 = vpop.f32.mrb[5].mxu0  ;;  %v646_v59 = vadd.f32 %v832_v53, %v739_v52 }
 0x2af   : > { %v638_v55 = vadd.f32 %v739_v52, %v637_v54  ;;  %v833_v56 = vpop.f32.mrb[6].mxu0 }
 0x2b0   : > { %v640_v57 = vpop.f32.mrb[7].mxu0  ;;  %v649_v60 = vadd.f32 %v833_v56, %v739_v52  ;;  %654 = vst [vmem:[%s253_s10 + $0x10] sm:$0xff] %v646_v59 }
 0x2b1   : > { %652 = vst [vmem:[%s253_s10] sm:$0xff] %v638_v55  ;;  %v641_v58 = vadd.f32 %v739_v52, %v640_v57 }
 0x2b2   : > { %655 = vst [vmem:[%s253_s10 + $0x18] sm:$0xff] %v649_v60 }
 0x2b3   : > { %653 = vst [vmem:[%s253_s10 + $0x8] sm:$0xff] %v641_v58 }
 0x2b4 PF: > { %s16_s21 = sadd.s32 1, %s876_s21  }
 0x2b5   : > { %p13_p4 = scmp.ge.s32.totalorder %s16_s21, 4  }
 0x2b7   :  { %15 = sbr.rel (!%p13_p4) target bundleno = 1 (0x1), region = 74 }

</bundles_post_ra>
